<compile_context>
chip_gen: v5e
topology: v5e:2x2
jax: 0.10.0
libtpu: 0.0.40
codegen_flags: <defaults>
</compile_context>

<pallas_src>
import jax
import jax.numpy as jnp
from jax.experimental import pallas as pl
from jax.experimental.pallas import tpu as pltpu


# ---------------------------------------------------------------------------
# Kernel: one fused forward pass over a batch tile.
#   obs_ref    : (TB, obs_dim)  f32
#   w1_ref     : (obs_dim, 128) f32   [w_pi1 | w_vf1]
#   w2_ref     : (128, 128)     f32   blockdiag(w_pi2, w_vf2)
#   w_head_ref : (128, 128)     f32   [w_act -> cols 0..A-1 (pi rows) ;
#                                      w_val -> col A (vf rows) ; zeros elsewhere]
#   bias_ref   : (3, 128)       f32   rows: [b1_cat, b2_cat, b_head_padded]
#   out_ref    : (TB, 128)      f32   cols 0..A-1 = action logits, col A = value
# ---------------------------------------------------------------------------
def policy_kernel(obs_ref, w1_ref, w2_ref, w_head_ref, bias_ref, out_ref):
    x = obs_ref[...]          # f32 already; no redundant cast
    bias = bias_ref[...]      # load bias slab once (3, 128)

    # fused pi/vf layer 1: Linear -> Tanh   (single 128-lane-wide matmul)
    h1 = jnp.tanh(
        jnp.dot(x, w1_ref[...], preferred_element_type=jnp.float32)
        + bias[0:1, :]
    )

    # fused pi/vf layer 2: Linear -> Tanh   (single 128x128 block-diagonal matmul)
    h2 = jnp.tanh(
        jnp.dot(h1, w2_ref[...], preferred_element_type=jnp.float32)
        + bias[1:2, :]
    )

    # fused action_net / value_net heads, lane-dense (128-wide, zero-padded) store
    out_ref[...] = (
        jnp.dot(h2, w_head_ref[...], preferred_element_type=jnp.float32)
        + bias[2:3, :]
    )


# ---------------------------------------------------------------------------
# Host-side packing of the original per-layer parameters into 4 fused buffers.
# Weights are stored [in_features, out_features] (PyTorch W.T), so x @ W + b.
# ---------------------------------------------------------------------------
def pack_params(p, *, hidden, n_actions):
    hid2 = 2 * hidden            # 128 for hidden=64
    head_pad = hid2              # pad head output to 128 lanes (lane-dense store)
    assert n_actions + 1 <= head_pad, "n_actions + 1 must fit in the 128-lane head"

    # layer 1: [w_pi1 | w_vf1] -> (obs_dim, 2*hidden)
    w1 = jnp.concatenate([p["w_pi1"], p["w_vf1"]], axis=1)
    b1 = jnp.concatenate([p["b_pi1"], p["b_vf1"]], axis=1)

    # layer 2: block-diagonal (2*hidden, 2*hidden)
    w2 = jnp.zeros((hid2, hid2), jnp.float32)
    w2 = w2.at[:hidden, :hidden].set(p["w_pi2"])
    w2 = w2.at[hidden:, hidden:].set(p["w_vf2"])
    b2 = jnp.concatenate([p["b_pi2"], p["b_vf2"]], axis=1)

    # heads: (2*hidden, head_pad); action from pi rows, value from vf rows
    w_head = jnp.zeros((hid2, head_pad), jnp.float32)
    w_head = w_head.at[:hidden, :n_actions].set(p["w_act"])
    w_head = w_head.at[hidden:, n_actions:n_actions + 1].set(p["w_val"])
    b_head = jnp.zeros((1, head_pad), jnp.float32)
    b_head = b_head.at[:, :n_actions].set(p["b_act"])
    b_head = b_head.at[:, n_actions:n_actions + 1].set(p["b_val"])

    # single bias slab (3, 128)
    bias = jnp.concatenate([b1, b2, b_head], axis=0)
    return w1, w2, w_head, bias


# ---------------------------------------------------------------------------
# Wrapper: batch-tiled pallas_call; splits action/value from the fused output.
# ---------------------------------------------------------------------------
def onnxable_policy_forward(obs, params, *, hidden=64):
    obs = obs.astype(jnp.float32)
    B, obs_dim = obs.shape
    n_actions = params["w_act"].shape[1]
    hid2 = 2 * hidden

    w1, w2, w_head, bias = pack_params(params, hidden=hidden, n_actions=n_actions)

    # Batch tiling:
    #   * small batches -> one tile, padded up to a multiple of 8 sublanes so the
    #     final store is a clean unmasked vst;
    #   * large rollout batches -> 1024-row tiles sharded across TensorCores via
    #     the "parallel" grid axis.  Per-tile VMEM (double-buffered obs + out) is
    #     ~1.3 MiB, far below the 16/32 MiB scoped defaults on v5e/v6e/v7x.
    max_tb = 1024
    if B <= max_tb:
        tb = -(-B // 8) * 8          # round up to sublane multiple
        b_pad = tb
    else:
        tb = max_tb
        b_pad = -(-B // tb) * tb
    obs_p = jnp.pad(obs, ((0, b_pad - B), (0, 0))) if b_pad != B else obs

    grid = (b_pad // tb,)
    resident = lambda shape: pl.BlockSpec(shape, lambda i: (0, 0))  # whole-array, VMEM-resident

    out = pl.pallas_call(
        policy_kernel,
        out_shape=jax.ShapeDtypeStruct((b_pad, hid2), jnp.float32),
        grid=grid,
        in_specs=[
            pl.BlockSpec((tb, obs_dim), lambda i: (i, 0)),
            resident(w1.shape),
            resident(w2.shape),
            resident(w_head.shape),
            resident(bias.shape),
        ],
        out_specs=pl.BlockSpec((tb, hid2), lambda i: (i, 0)),
        compiler_params=pltpu.CompilerParams(dimension_semantics=("parallel",)),
    )(obs_p, w1, w2, w_head, bias)

    out = out[:B]
    action = out[:, :n_actions]
    value = out[:, n_actions:n_actions + 1]
    return action, value


# ---------------------------------------------------------------------------
# Synthetic parameters (deterministic) and pure-JAX reference.
# ---------------------------------------------------------------------------
def init_params(key, obs_dim, hidden, n_actions):
    keys = jax.random.split(key, 12)

    def lin(kw, kb, fan_in, fan_out):
        scale = 1.0 / jnp.sqrt(jnp.float32(fan_in))
        w = jax.random.uniform(kw, (fan_in, fan_out), jnp.float32, -scale, scale)
        b = jax.random.uniform(kb, (1, fan_out), jnp.float32, -scale, scale)
        return w, b

    w_pi1, b_pi1 = lin(keys[0], keys[1], obs_dim, hidden)
    w_pi2, b_pi2 = lin(keys[2], keys[3], hidden, hidden)
    w_vf1, b_vf1 = lin(keys[4], keys[5], obs_dim, hidden)
    w_vf2, b_vf2 = lin(keys[6], keys[7], hidden, hidden)
    w_act, b_act = lin(keys[8], keys[9], hidden, n_actions)
    w_val, b_val = lin(keys[10], keys[11], hidden, 1)

    return dict(
        w_pi1=w_pi1, b_pi1=b_pi1, w_pi2=w_pi2, b_pi2=b_pi2,
        w_vf1=w_vf1, b_vf1=b_vf1, w_vf2=w_vf2, b_vf2=b_vf2,
        w_act=w_act, b_act=b_act, w_val=w_val, b_val=b_val,
    )


def reference_forward(obs, p):
    """Pure-JAX reference mirroring the PyTorch forward (unfused)."""
    x = obs.astype(jnp.float32)
    h_pi = jnp.tanh(jnp.tanh(x @ p["w_pi1"] + p["b_pi1"]) @ p["w_pi2"] + p["b_pi2"])
    h_vf = jnp.tanh(jnp.tanh(x @ p["w_vf1"] + p["b_vf1"]) @ p["w_vf2"] + p["b_vf2"])
    return h_pi @ p["w_act"] + p["b_act"], h_vf @ p["w_val"] + p["b_val"]


if __name__ == "__main__":
    B, OBS_DIM, HIDDEN, N_ACTIONS = 8, 32, 64, 4

    key = jax.random.PRNGKey(0)
    k_obs, k_params = jax.random.split(key)

    obs = jax.random.normal(k_obs, (B, OBS_DIM), dtype=jnp.float32)
    params = init_params(k_params, OBS_DIM, HIDDEN, N_ACTIONS)

    action, value = onnxable_policy_forward(obs, params, hidden=HIDDEN)
    action = jax.block_until_ready(action)
    value = jax.block_until_ready(value)

    ref_action, ref_value = reference_forward(obs, params)
    assert action.shape == (B, N_ACTIONS) and value.shape == (B, 1)
    assert jnp.allclose(action, ref_action, atol=1e-5, rtol=1e-5)
    assert jnp.allclose(value, ref_value, atol=1e-5, rtol=1e-5)

    print("KERNEL_OK")
</pallas_src>

<mosaic_0001>
module attributes {stable_mosaic.version = 11 : i64} {
  func.func @policy_kernel(%arg0: i32, %arg1: memref<8x32xf32, #tpu.memory_space<vmem>>, %arg2: memref<32x128xf32, #tpu.memory_space<vmem>>, %arg3: memref<128x128xf32, #tpu.memory_space<vmem>>, %arg4: memref<128x128xf32, #tpu.memory_space<vmem>>, %arg5: memref<3x128xf32, #tpu.memory_space<vmem>>, %arg6: memref<8x128xf32, #tpu.memory_space<vmem>>) attributes {dimension_semantics = [#tpu.dimension_semantics<parallel>], iteration_bounds = array<i64: 1>, scalar_prefetch = 0 : i64, scratch_operands = 0 : i64, tpu.core_type = #tpu.core_type<tc>, window_params = [{transform_indices = @transform_0, window_bounds = array<i64: 8, 32>}, {pipeline_mode = #tpu.pipeline_mode<synchronous>, transform_indices = @transform_1, window_bounds = array<i64: 32, 128>}, {pipeline_mode = #tpu.pipeline_mode<synchronous>, transform_indices = @transform_2, window_bounds = array<i64: 128, 128>}, {pipeline_mode = #tpu.pipeline_mode<synchronous>, transform_indices = @transform_3, window_bounds = array<i64: 128, 128>}, {pipeline_mode = #tpu.pipeline_mode<synchronous>, transform_indices = @transform_4, window_bounds = array<i64: 3, 128>}, {transform_indices = @transform_5, window_bounds = array<i64: 8, 128>}]} {
    %c0 = arith.constant 0 : index
    %c0_0 = arith.constant 0 : index
    %0 = vector.load %arg1[%c0, %c0_0] : memref<8x32xf32, #tpu.memory_space<vmem>>, vector<8x32xf32>
    %c0_1 = arith.constant 0 : index
    %c0_2 = arith.constant 0 : index
    %1 = vector.load %arg5[%c0_1, %c0_2] : memref<3x128xf32, #tpu.memory_space<vmem>>, vector<3x128xf32>
    %c0_3 = arith.constant 0 : index
    %c0_4 = arith.constant 0 : index
    %2 = vector.load %arg2[%c0_3, %c0_4] : memref<32x128xf32, #tpu.memory_space<vmem>>, vector<32x128xf32>
    %cst = arith.constant dense<0.000000e+00> : vector<8x128xf32>
    %3 = tpu.matmul %0, %2, %cst {dimension_numbers = #tpu.dot_dimension_numbers<[1], [0], [0], [1], [0, 0, 1, 1], [], []>} : vector<8x32xf32>, vector<32x128xf32>, vector<8x128xf32> -> vector<8x128xf32>
    %4 = vector.extract_strided_slice %1 {offsets = [0, 0], sizes = [1, 128], strides = [1, 1]} : vector<3x128xf32> to vector<1x128xf32>
    %5 = vector.broadcast %4 : vector<1x128xf32> to vector<8x128xf32>
    %6 = arith.addf %3, %5 : vector<8x128xf32>
    %7 = math.tanh %6 : vector<8x128xf32>
    %c0_5 = arith.constant 0 : index
    %c0_6 = arith.constant 0 : index
    %8 = vector.load %arg3[%c0_5, %c0_6] : memref<128x128xf32, #tpu.memory_space<vmem>>, vector<128x128xf32>
    %cst_7 = arith.constant dense<0.000000e+00> : vector<8x128xf32>
    %9 = tpu.matmul %7, %8, %cst_7 {dimension_numbers = #tpu.dot_dimension_numbers<[1], [0], [0], [1], [0, 0, 1, 1], [], []>} : vector<8x128xf32>, vector<128x128xf32>, vector<8x128xf32> -> vector<8x128xf32>
    %10 = vector.extract_strided_slice %1 {offsets = [1, 0], sizes = [1, 128], strides = [1, 1]} : vector<3x128xf32> to vector<1x128xf32>
    %11 = vector.broadcast %10 : vector<1x128xf32> to vector<8x128xf32>
    %12 = arith.addf %9, %11 : vector<8x128xf32>
    %13 = math.tanh %12 : vector<8x128xf32>
    %c0_8 = arith.constant 0 : index
    %c0_9 = arith.constant 0 : index
    %14 = vector.load %arg4[%c0_8, %c0_9] : memref<128x128xf32, #tpu.memory_space<vmem>>, vector<128x128xf32>
    %cst_10 = arith.constant dense<0.000000e+00> : vector<8x128xf32>
    %15 = tpu.matmul %13, %14, %cst_10 {dimension_numbers = #tpu.dot_dimension_numbers<[1], [0], [0], [1], [0, 0, 1, 1], [], []>} : vector<8x128xf32>, vector<128x128xf32>, vector<8x128xf32> -> vector<8x128xf32>
    %16 = vector.extract_strided_slice %1 {offsets = [2, 0], sizes = [1, 128], strides = [1, 1]} : vector<3x128xf32> to vector<1x128xf32>
    %17 = vector.broadcast %16 : vector<1x128xf32> to vector<8x128xf32>
    %18 = arith.addf %15, %17 : vector<8x128xf32>
    %c0_11 = arith.constant 0 : index
    %c0_12 = arith.constant 0 : index
    %19 = vector.load %arg6[%c0_11, %c0_12] : memref<8x128xf32, #tpu.memory_space<vmem>>, vector<8x128xf32>
    tpu.vector_store %arg6[%c0_11, %c0_12], %18 {strides = array<i32>} : memref<8x128xf32, #tpu.memory_space<vmem>>, vector<8x128xf32>,
    return
  }
  func.func @transform_0(%arg0: i32) -> (i32, i32) {
    %c0_i32 = arith.constant 0 : i32
    %c0_i32_0 = arith.constant 0 : i32
    return %arg0, %c0_i32 : i32, i32
  }
  func.func @transform_1(%arg0: i32) -> (i32, i32) {
    %c0_i32 = arith.constant 0 : i32
    %c0_i32_0 = arith.constant 0 : i32
    %c0_i32_1 = arith.constant 0 : i32
    return %c0_i32, %c0_i32_0 : i32, i32
  }
  func.func @transform_2(%arg0: i32) -> (i32, i32) {
    %c0_i32 = arith.constant 0 : i32
    %c0_i32_0 = arith.constant 0 : i32
    %c0_i32_1 = arith.constant 0 : i32
    return %c0_i32, %c0_i32_0 : i32, i32
  }
  func.func @transform_3(%arg0: i32) -> (i32, i32) {
    %c0_i32 = arith.constant 0 : i32
    %c0_i32_0 = arith.constant 0 : i32
    %c0_i32_1 = arith.constant 0 : i32
    return %c0_i32, %c0_i32_0 : i32, i32
  }
  func.func @transform_4(%arg0: i32) -> (i32, i32) {
    %c0_i32 = arith.constant 0 : i32
    %c0_i32_0 = arith.constant 0 : i32
    %c0_i32_1 = arith.constant 0 : i32
    return %c0_i32, %c0_i32_0 : i32, i32
  }
  func.func @transform_5(%arg0: i32) -> (i32, i32) {
    %c0_i32 = arith.constant 0 : i32
    %c0_i32_0 = arith.constant 0 : i32
    return %arg0, %c0_i32 : i32, i32
  }
}

</mosaic_0001>

<bundles_post_ra>
// kernel: tpu_custom_call.1
= control target key start
LH: loop header
LB: loop body
LE: loop exit
PB: predicated region body
PF: predicated region fallthrough
CT: control target
= control target key end

     0   :  { %10 = vsyncpa [#allocation3], 0  ;;  %s443_s0 = inlined_call_operand.hbm [shape: f32[8,32], index: 0, kind: input, shape index: {}]   ;;  %s444_s1 = inlined_call_operand.hbm [shape: f32[32,128], index: 1, kind: input, shape index: {}]   ;;  %s445_s2 = inlined_call_operand.hbm [shape: f32[128,128], index: 2, kind: input, shape index: {}]   ;;  %s446_s3 = inlined_call_operand.hbm [shape: f32[128,128], index: 3, kind: input, shape index: {}]   ;;  %s447_s4 = inlined_call_operand.hbm [shape: f32[3,128], index: 4, kind: input, shape index: {}]   ;;  %s448_s5 = inlined_call_operand.hbm [shape: f32[8,128], index: 5, kind: output, shape index: {}]  }
   0x1   :  { %11 = vsyncpa [#allocation6], 0 }
   0x2   :  { %12 = vsyncpa [#allocation9], 0  ;;  %s29_s20 = sshll.u32 %s444_s1, 4  ;;  %s30_s20 = int_to_ptr.hbm [resolvable:$true] %s29_s20 }
   0x3   :  { %13 = vsyncpa [#allocation4], 0  ;;  %s387_s21 = smov [#allocation5]   ;;  %s55_s25 = sshll.u32 %s446_s3, 4  ;;  %s56_s25 = int_to_ptr.hbm [resolvable:$true] %s55_s25 }
   0x4   :  { %s31_s22 = sshll.u32 %s387_s21, 4  ;;  %s388_s26 = smov 128   ;;  %s32_s22 = int_to_ptr.vmem [resolvable:$true] %s31_s22 }
   0x5   :  { %s389_s27 = smov 8   ;;  %s390_s28 = smov [#allocation8]  }
   0x6   :  { %37 = dma.hbm_to_vmem [thread:$0]  %s30_s20, 512, %s32_s22, [#allocation6], %s388_s26, %s388_s26, %s389_s27  }
   0x7   :  { %s57_s29 = sshll.u32 %s390_s28, 4  ;;  %s19_s7 = sshll.u32 %s443_s0, 4  ;;  %s58_s29 = int_to_ptr.vmem [resolvable:$true] %s57_s29  ;;  %s20_s7 = int_to_ptr.hbm [resolvable:$true] %s19_s7 }
   0x8   :  { %63 = dma.hbm_to_vmem [thread:$0]  %s56_s25, 2048, %s58_s29, [#allocation9], %s388_s26, %s388_s26, %s389_s27  }
   0x9   :  { %s42_s9 = sshll.u32 %s445_s2, 4  ;;  %s391_s10 = smov [#allocation2]   ;;  %s43_s9 = int_to_ptr.hbm [resolvable:$true] %s42_s9 }
   0xa   :  { %s21_s11 = sshll.u32 %s391_s10, 4  ;;  %s392_s3 = smov [#allocation7]   ;;  %s22_s11 = int_to_ptr.vmem [resolvable:$true] %s21_s11 }
   0xb   :  { %24 = dma.hbm_to_vmem [thread:$0]  %s20_s7, 128, %s22_s11, [#allocation3]  }
   0xc   :  { %s44_s12 = sshll.u32 %s392_s3, 4  ;;  %s69_s15 = sshll.u32 %s447_s4, 4  ;;  %s45_s12 = int_to_ptr.vmem [resolvable:$true] %s44_s12  ;;  %s70_s15 = int_to_ptr.hbm [resolvable:$true] %s69_s15 }
   0xd   :  { %50 = dma.hbm_to_vmem [thread:$0]  %s43_s9, 2048, %s45_s12, [#allocation6], %s388_s26, %s388_s26, %s389_s27  }
   0xe   :  { %s393_s0 = smov [#allocation10]  }
   0xf   :  { %s71_s16 = sshll.u32 %s393_s0, 4  ;;  %s72_s16 = int_to_ptr.vmem [resolvable:$true] %s71_s16 }
  0x10   :  { %74 = dma.hbm_to_vmem [thread:$0]  %s70_s15, 64, %s72_s16, [#allocation9]  }
  0x11   :  { %379 = dma.done.wait [#allocation3], 128  }
  0x12   :  { %380 = vsyncadd [#allocation3], 4294967168 }
  0x13   :  { %381 = dma.done.wait [#allocation6], 2560  }
  0x14   :  { %382 = vsyncadd [#allocation6], 4294964736 }
  0x15   :  { %383 = dma.done.wait [#allocation9], 2112  }
  0x16   :  { %384 = vsyncadd [#allocation9], 4294965184  ;;  %v100_v0 = vld [vmem:[#allocation5 + $0x18] sm:$0xff]  ;;  %v99_v1 = vld [vmem:[#allocation5 + $0x10] sm:$0xff]  ;;  %vm102_vm0 = vcmask 261120   ;;  %s394_s2 = smov [#allocation11]  }
  0x17   :  { %118 = vmatpush.msra.mxu0 %v100_v0  ;;  %v142_v2 = vld [vmem:[#allocation7 + $0x78] sm:$0xff]  ;;  %v98_v3 = vld [vmem:[#allocation5 + $0x8] sm:$0xff]  ;;  %v141_v4 = vld [vmem:[#allocation7 + $0x70] sm:$0xff]  ;;  %s208_s4 = sshll.u32 %s394_s2, 4  ;;  %s210_s19 = sshll.u32 %s448_s5, 4  ;;  %s209_s4 = int_to_ptr.vmem [resolvable:$true] %s208_s4  ;;  %s211_s19 = int_to_ptr.hbm [resolvable:$true] %s210_s19 }
  0x18   :  { %144 = vmatpush.msra.mxu1 %v142_v2  ;;  %v140_v5 = vld [vmem:[#allocation7 + $0x68] sm:$0xff]  ;;  %v97_v6 = vld [vmem:[#allocation5] sm:$0xff]  ;;  %v95_v7 = vld [vmem:[#allocation2] sm:$0xff] }
  0x19   :  { %119 = vmatpush.msra.mxu0 %v99_v1  ;;  %v139_v8 = vld [vmem:[#allocation7 + $0x60] sm:$0xff]  ;;  %v138_v9 = vld [vmem:[#allocation7 + $0x58] sm:$0xff]  ;;  %v137_v10 = vld [vmem:[#allocation7 + $0x50] sm:$0xff] }
  0x1a   :  { %145 = vmatpush.msra.mxu1 %v141_v4  ;;  %v136_v11 = vld [vmem:[#allocation7 + $0x48] sm:$0xff]  ;;  %v135_v12 = vld [vmem:[#allocation7 + $0x40] sm:$0xff]  ;;  %v134_v13 = vld [vmem:[#allocation7 + $0x38] sm:$0xff] }
  0x1b   :  { %120 = vmatpush.msra.mxu0 %v98_v3  ;;  %v133_v14 = vld [vmem:[#allocation7 + $0x30] sm:$0xff]  ;;  %v132_v15 = vld [vmem:[#allocation7 + $0x28] sm:$0xff]  ;;  %v131_v16 = vld [vmem:[#allocation7 + $0x20] sm:$0xff] }
  0x1c   :  { %146 = vmatpush.msra.mxu1 %v140_v5  ;;  %v130_v17 = vld [vmem:[#allocation7 + $0x18] sm:$0xff]  ;;  %v129_v18 = vld [vmem:[#allocation7 + $0x10] sm:$0xff]  ;;  %v128_v19 = vld [vmem:[#allocation7 + $0x8] sm:$0xff] }
  0x1d   :  { %121 = vmatpush.msra.mxu0 %v97_v6  ;;  %v127_v20 = vld [vmem:[#allocation7] sm:$0xff]  ;;  %v180_v21 = vld [vmem:[#allocation8 + $0x78] sm:$0xff]  ;;  %v179_v22 = vld [vmem:[#allocation8 + $0x70] sm:$0xff] }
  0x1e   :  { %222 = vmatmul.msk.f32.vlgmr.msra.gmra.mxu0 %vm102_vm0, %v95_v7  ;;  %147 = vmatpush.msra.mxu1 %v139_v8  ;;  %v178_v23 = vld [vmem:[#allocation8 + $0x68] sm:$0xff]  ;;  %v177_v24 = vld [vmem:[#allocation8 + $0x60] sm:$0xff]  ;;  %v176_v25 = vld [vmem:[#allocation8 + $0x58] sm:$0xff] }
  0x1f   :  { %182 = vmatpush.msra.mxu2 %v180_v21  ;;  %v175_v26 = vld [vmem:[#allocation8 + $0x50] sm:$0xff]  ;;  %v174_v27 = vld [vmem:[#allocation8 + $0x48] sm:$0xff]  ;;  %v173_v28 = vld [vmem:[#allocation8 + $0x40] sm:$0xff] }
  0x20   :  { %148 = vmatpush.msra.mxu1 %v138_v9  ;;  %v172_v29 = vld [vmem:[#allocation8 + $0x38] sm:$0xff]  ;;  %v96_v30 = vld [vmem:[#allocation10] sm:$0x7]  ;;  %v171_v31 = vld [vmem:[#allocation8 + $0x30] sm:$0xff] }
  0x21   :  { %183 = vmatpush.msra.mxu2 %v179_v22  ;;  %v170_v32 = vld [vmem:[#allocation8 + $0x28] sm:$0xff]  ;;  %v101_v33 = vperm.slane %v96_v30, 0  ;;  %v169_v37 = vld [vmem:[#allocation8 + $0x20] sm:$0xff]  ;;  %v168_v38 = vld [vmem:[#allocation8 + $0x18] sm:$0xff]  ;;  %v143_v42 = vperm.slane %v96_v30, 1  ;;  %v181_v46 = vperm.slane %v96_v30, 2 }
  0x22   :  { %149 = vmatpush.msra.mxu1 %v137_v10  ;;  %v167_v39 = vld [vmem:[#allocation8 + $0x10] sm:$0xff]  ;;  %v166_v40 = vld [vmem:[#allocation8 + $0x8] sm:$0xff]  ;;  %v165_v41 = vld [vmem:[#allocation8] sm:$0xff] }
  0x23   :  { %184 = vmatpush.msra.mxu2 %v178_v23 }
  0x24   :  { %150 = vmatpush.msra.mxu1 %v136_v11 }
  0x25   :  { %185 = vmatpush.msra.mxu2 %v177_v24 }
  0x26   :  { %151 = vmatpush.msra.mxu1 %v135_v12 }
  0x27   :  { %186 = vmatpush.msra.mxu2 %v176_v25 }
  0x28   :  { %152 = vmatpush.msra.mxu1 %v134_v13 }
  0x29   :  { %187 = vmatpush.msra.mxu2 %v175_v26 }
  0x2a   :  { %153 = vmatpush.msra.mxu1 %v133_v14 }
  0x2b   :  { %188 = vmatpush.msra.mxu2 %v174_v27 }
  0x2c   :  { %154 = vmatpush.msra.mxu1 %v132_v15 }
  0x2d   :  { %189 = vmatpush.msra.mxu2 %v173_v28 }
  0x2e   :  { %155 = vmatpush.msra.mxu1 %v131_v16 }
  0x2f   :  { %190 = vmatpush.msra.mxu2 %v172_v29 }
  0x30   :  { %156 = vmatpush.msra.mxu1 %v130_v17 }
  0x31   :  { %191 = vmatpush.msra.mxu2 %v171_v31 }
  0x32   :  { %157 = vmatpush.msra.mxu1 %v129_v18 }
  0x33   :  { %192 = vmatpush.msra.mxu2 %v170_v32 }
  0x34   :  { %158 = vmatpush.msra.mxu1 %v128_v19 }
  0x35   :  { %193 = vmatpush.msra.mxu2 %v169_v37 }
  0x36   :  { %159 = vmatpush.msra.mxu1 %v127_v20 }
  0x37   :  { %194 = vmatpush.msra.mxu2 %v168_v38 }
  0x39   :  { %195 = vmatpush.msra.mxu2 %v167_v39 }
  0x3b   :  { %196 = vmatpush.msra.mxu2 %v166_v40 }
  0x3d   :  { %197 = vmatpush.msra.mxu2 %v165_v41 }
  0x9b   :  { %v123_v34 = vpop.f32.mrf.mxu0 }
  0x9c   :  { %v124_v35 = vadd.f32 %v123_v34, %v101_v33 }
  0x9e   :  { %231 = vtanh.f32 %v124_v35 }
  0xa4   :  { %v232_v36 = vpop.eup %231 }
  0xa5   :  { %160 = vmatmul.f32.vlgmr.msra.gmra.mxu1 %v232_v36 }
 0x122   :  { %v161_v43 = vpop.f32.mrf.mxu1 }
 0x123   :  { %v162_v44 = vadd.f32 %v161_v43, %v143_v42 }
 0x125   :  { %233 = vtanh.f32 %v162_v44 }
 0x12b   :  { %v234_v45 = vpop.eup %233 }
 0x12c   :  { %198 = vmatmul.f32.vlgmr.msra.gmra.mxu2 %v234_v45 }
 0x1af   :  { %v199_v47 = vpop.f32.mrf.mxu2 }
 0x1b0   :  { %v200_v48 = vadd.f32 %v199_v47, %v181_v46 }
 0x1b2   :  { %202 = vst [vmem:[#allocation11] sm:$0xff] %v200_v48 }
 0x1b3   :  { %213 = dma.vmem_to_hbm [thread:$0]  %s209_s4, 128, %s211_s19, [#allocation4]  }
 0x1b4   :  { %385 = dma.done.wait [#allocation4], 128  }
 0x1b5   :  { %386 = vsyncadd [#allocation4], 4294967168 }
 0x1b6   :  { %218 = vsyncpa [#allocation3], 1 }
 0x1b7   :  { %219 = vsyncpa [#allocation6], 1 }
 0x1b8   :  { %220 = vsyncpa [#allocation9], 1 }
 0x1b9   :  { %221 = vsyncpa [#allocation4], 1 }

</bundles_post_ra>
